<compile_context>
chip_gen: v6e
topology: v6e:2x2x1
jax: 0.10.0
libtpu: 0.0.40
codegen_flags: <defaults>
</compile_context>

<pallas_src>
import functools
import math

import jax
import jax.numpy as jnp
from jax.experimental import pallas as pl
from jax.experimental.pallas import tpu as pltpu


# ----------------------------- in-kernel helpers -----------------------------

def _layer_norm(x, gamma, beta, eps=1e-5):
    # PyTorch nn.LayerNorm: biased variance over the last dim, eps=1e-5.
    mu = jnp.mean(x, axis=-1, keepdims=True)
    xc = x - mu
    var = jnp.mean(xc * xc, axis=-1, keepdims=True)
    return xc * jax.lax.rsqrt(var + eps) * gamma + beta


def _gelu_exact(x):
    # PyTorch nn.GELU() default: exact erf-based GELU.
    return 0.5 * x * (1.0 + jax.lax.erf(x * (1.0 / math.sqrt(2.0))))


# ---------------------------------- kernel -----------------------------------

def transformer_layer_kernel(x_ref, vec_ref, b1_ref, wqkv_ref, wout_ref,
                             w1_ref, w2_ref, o_ref, x_acc, *, heads):
    """One (batch element, layer) grid step: Attention + FeedForward, residuals."""
    d = pl.program_id(1)

    # Load this batch element's tokens into the carried accumulator at layer 0.
    @pl.when(d == 0)
    def _():
        x_acc[...] = x_ref[...].astype(jnp.float32)

    x = x_acc[...]                                   # (N, D) f32
    vec = vec_ref[...]                               # (5, D) packed per-layer vectors
    attn_g, attn_b = vec[0:1, :], vec[1:2, :]
    ff_g, ff_b, ff_b2 = vec[2:3, :], vec[3:4, :], vec[4:5, :]

    # --------------------------- Attention(x) + x ---------------------------
    xn = _layer_norm(x, attn_g, attn_b)              # (N, D)
    xnh = jnp.broadcast_to(xn[None, :, :], (heads,) + xn.shape)    # (H, N, D)

    w = wqkv_ref[...]                                # (3, H, D, dh), head-major
    # 1/sqrt(dim_head) is pre-folded into the q weights at packing time.
    q3 = jnp.einsum('hnd,hdk->hnk', xnh, w[0], preferred_element_type=jnp.float32)
    k3 = jnp.einsum('hnd,hdk->hnk', xnh, w[1], preferred_element_type=jnp.float32)
    v3 = jnp.einsum('hnd,hdk->hnk', xnh, w[2], preferred_element_type=jnp.float32)

    dots = jnp.einsum('hnd,hmd->hnm', q3, k3,
                      preferred_element_type=jnp.float32)          # (H, N, N)
    dots = dots - jnp.max(dots, axis=-1, keepdims=True)            # stable softmax
    p = jnp.exp(dots)
    p = p / jnp.sum(p, axis=-1, keepdims=True)       # exact divide (tight accuracy)
    outh = jnp.einsum('hnm,hmd->hnd', p, v3,
                      preferred_element_type=jnp.float32)          # (H, N, dh)

    # Reassemble (N, inner) once and do ONE projection matmul with K = inner
    # (head sum folded into the MXU contraction; w_out stored as (inner, dim)).
    outc = jnp.concatenate([outh[h] for h in range(heads)], axis=-1)  # (N, inner)
    x = jnp.dot(outc, wout_ref[...], preferred_element_type=jnp.float32) + x

    # -------------------------- FeedForward(x) + x --------------------------
    xn = _layer_norm(x, ff_g, ff_b)
    h1 = jnp.dot(xn, w1_ref[...], preferred_element_type=jnp.float32) + b1_ref[...]
    h1 = _gelu_exact(h1)
    x = jnp.dot(h1, w2_ref[...], preferred_element_type=jnp.float32) + ff_b2 + x

    # Carry for the next layer; o_ref is written back to HBM only when the
    # batch block index changes (i.e. after the last layer).
    x_acc[...] = x
    o_ref[...] = x.astype(o_ref.dtype)


# --------------------------------- wrapper -----------------------------------

def transformer_forward(x, kp, *, heads, dim_head):
    """x: (B, N, dim) -> (B, N, dim).  grid = (B 'parallel', depth 'arbitrary')."""
    B, N, D = x.shape
    depth = kp["wqkv"].shape[0]
    mlp_dim = kp["w1"].shape[-1]
    inner = heads * dim_head

    kernel = functools.partial(transformer_layer_kernel, heads=heads)

    return pl.pallas_call(
        kernel,
        out_shape=jax.ShapeDtypeStruct((B, N, D), x.dtype),
        grid_spec=pltpu.PrefetchScalarGridSpec(
            num_scalar_prefetch=0,
            grid=(B, depth),
            in_specs=[
                # activations: one batch element per grid point (constant over d)
                pl.BlockSpec((None, N, D), lambda b, d: (b, 0, 0)),
                # per-layer packed vectors / biases / weights (streamed over d)
                pl.BlockSpec((None, 5, D), lambda b, d: (d, 0, 0)),
                pl.BlockSpec((None, 1, mlp_dim), lambda b, d: (d, 0, 0)),
                pl.BlockSpec((None, 3, heads, D, dim_head),
                             lambda b, d: (d, 0, 0, 0, 0)),
                pl.BlockSpec((None, inner, D), lambda b, d: (d, 0, 0)),
                pl.BlockSpec((None, D, mlp_dim), lambda b, d: (d, 0, 0)),
                pl.BlockSpec((None, mlp_dim, D), lambda b, d: (d, 0, 0)),
            ],
            out_specs=pl.BlockSpec((None, N, D), lambda b, d: (b, 0, 0)),
            scratch_shapes=[pltpu.VMEM((N, D), jnp.float32)],   # x carried across layers
        ),
        compiler_params=pltpu.CompilerParams(
            dimension_semantics=("parallel", "arbitrary")),
    )(x, kp["vecs"], kp["b1"], kp["wqkv"], kp["w_out"], kp["w1"], kp["w2"])


# --------------------------- parameters & packing -----------------------------

def init_transformer_params(key, *, dim, depth, heads, dim_head, mlp_dim):
    """Logical (PyTorch-equivalent) params; linear weights stored (in, out)."""
    inner = heads * dim_head
    ks = jax.random.split(key, 10)
    return {
        "attn_g": 1.0 + 0.1 * jax.random.normal(ks[0], (depth, dim), jnp.float32),
        "attn_b": 0.1 * jax.random.normal(ks[1], (depth, dim), jnp.float32),
        "ff_g":   1.0 + 0.1 * jax.random.normal(ks[2], (depth, dim), jnp.float32),
        "ff_b":   0.1 * jax.random.normal(ks[3], (depth, dim), jnp.float32),
        "ff_b2":  0.1 * jax.random.normal(ks[4], (depth, dim), jnp.float32),
        "b1":     0.1 * jax.random.normal(ks[5], (depth, mlp_dim), jnp.float32),
        "w_qkv":  0.02 * jax.random.normal(ks[6], (depth, dim, 3 * inner), jnp.float32),
        "w_out":  0.02 * jax.random.normal(ks[7], (depth, inner, dim), jnp.float32),
        "w1":     0.02 * jax.random.normal(ks[8], (depth, dim, mlp_dim), jnp.float32),
        "w2":     0.02 * jax.random.normal(ks[9], (depth, mlp_dim, dim), jnp.float32),
    }


def pack_kernel_params(p, *, heads, dim_head):
    """One-time transform to kernel layout (head-major QKV, scale folded into W_q)."""
    depth, dim, _ = p["w_qkv"].shape
    scale = dim_head ** (-0.5)
    wq, wk, wv = jnp.split(p["w_qkv"], 3, axis=-1)            # (depth, dim, inner) each

    def head_major(w):  # (depth, dim, inner) -> (depth, heads, dim, dim_head)
        return w.reshape(depth, dim, heads, dim_head).transpose(0, 2, 1, 3)

    wqkv = jnp.stack([head_major(wq * scale), head_major(wk), head_major(wv)],
                     axis=1)                                   # (depth, 3, H, dim, dh)
    vecs = jnp.stack([p["attn_g"], p["attn_b"], p["ff_g"], p["ff_b"], p["ff_b2"]],
                     axis=1)                                   # (depth, 5, dim)
    return {
        "vecs": vecs,
        "b1": p["b1"][:, None, :],        # (depth, 1, mlp_dim)
        "wqkv": wqkv,                     # (depth, 3, heads, dim, dim_head)
        "w_out": p["w_out"],              # (depth, inner, dim)
        "w1": p["w1"],                    # (depth, dim, mlp_dim)
        "w2": p["w2"],                    # (depth, mlp_dim, dim)
    }


# ------------------------------ reference (JAX) -------------------------------

def _ref_forward(x, p, *, heads, dim_head):
    """Exact PyTorch-module semantics in plain JAX (unscaled weights, scale on dots)."""
    B, N, D = x.shape
    inner = heads * dim_head
    depth = p["w_qkv"].shape[0]
    scale = dim_head ** (-0.5)

    def ln(v, g, b):
        mu = jnp.mean(v, -1, keepdims=True)
        var = jnp.mean((v - mu) ** 2, -1, keepdims=True)
        return (v - mu) / jnp.sqrt(var + 1e-5) * g + b

    for d in range(depth):
        xn = ln(x, p["attn_g"][d], p["attn_b"][d])
        qkv = xn @ p["w_qkv"][d]
        q, k, v = jnp.split(qkv, 3, axis=-1)

        def split_heads(t):
            return t.reshape(B, N, heads, dim_head).transpose(0, 2, 1, 3)

        q, k, v = map(split_heads, (q, k, v))
        dots = jnp.einsum("bhnd,bhmd->bhnm", q, k) * scale
        attn = jax.nn.softmax(dots, axis=-1)
        out = jnp.einsum("bhnm,bhmd->bhnd", attn, v)
        out = out.transpose(0, 2, 1, 3).reshape(B, N, inner)
        x = out @ p["w_out"][d] + x

        xn = ln(x, p["ff_g"][d], p["ff_b"][d])
        h = xn @ p["w1"][d] + p["b1"][d]
        h = 0.5 * h * (1.0 + jax.lax.erf(h / jnp.sqrt(2.0)))
        x = h @ p["w2"][d] + p["ff_b2"][d] + x
    return x


# ----------------------------------- main -------------------------------------

if __name__ == "__main__":
    # Small config consistent with the module's forward: x is (B, N, dim).
    B, N = 2, 8
    dim, depth, heads, dim_head, mlp_dim = 32, 2, 4, 8, 64

    key = jax.random.PRNGKey(0)
    kx, kp = jax.random.split(key)
    x = jax.random.normal(kx, (B, N, dim), jnp.float32)
    params = init_transformer_params(kp, dim=dim, depth=depth, heads=heads,
                                     dim_head=dim_head, mlp_dim=mlp_dim)
    kparams = pack_kernel_params(params, heads=heads, dim_head=dim_head)

    fwd = jax.jit(functools.partial(transformer_forward, heads=heads,
                                    dim_head=dim_head))
    out = jax.block_until_ready(fwd(x, kparams))

    ref = _ref_forward(x, params, heads=heads, dim_head=dim_head)
    assert out.shape == (B, N, dim)
    # All matmuls f32, exact softmax divide -> tight agreement with the reference.
    assert jnp.allclose(out, ref, atol=1e-4, rtol=1e-4), "mismatch vs JAX reference"

    print("KERNEL_OK")
</pallas_src>

<mosaic_0001>
module attributes {stable_mosaic.version = 11 : i64} {
  func.func @transformer_layer_kernel(%arg0: i32, %arg1: i32, %arg2: memref<1x8x32xf32, #tpu.memory_space<vmem>>, %arg3: memref<1x5x32xf32, #tpu.memory_space<vmem>>, %arg4: memref<1x1x64xf32, #tpu.memory_space<vmem>>, %arg5: memref<1x3x4x32x8xf32, #tpu.memory_space<vmem>>, %arg6: memref<1x32x32xf32, #tpu.memory_space<vmem>>, %arg7: memref<1x32x64xf32, #tpu.memory_space<vmem>>, %arg8: memref<1x64x32xf32, #tpu.memory_space<vmem>>, %arg9: memref<1x8x32xf32, #tpu.memory_space<vmem>>, %arg10: memref<8x32xf32, #tpu.memory_space<vmem>>) attributes {dimension_semantics = [#tpu.dimension_semantics<parallel>, #tpu.dimension_semantics<arbitrary>], iteration_bounds = array<i64: 2, 2>, scalar_prefetch = 0 : i64, scratch_operands = 1 : i64, tpu.core_type = #tpu.core_type<tc>, window_params = [{transform_indices = @transform_0, window_bounds = array<i64: 1, 8, 32>}, {transform_indices = @transform_1, window_bounds = array<i64: 1, 5, 32>}, {transform_indices = @transform_2, window_bounds = array<i64: 1, 1, 64>}, {transform_indices = @transform_3, window_bounds = array<i64: 1, 3, 4, 32, 8>}, {transform_indices = @transform_4, window_bounds = array<i64: 1, 32, 32>}, {transform_indices = @transform_5, window_bounds = array<i64: 1, 32, 64>}, {transform_indices = @transform_6, window_bounds = array<i64: 1, 64, 32>}, {transform_indices = @transform_7, window_bounds = array<i64: 1, 8, 32>}]} {
    %c0_i32 = arith.constant 0 : i32
    %0 = arith.cmpi eq, %arg1, %c0_i32 : i32
    %1 = arith.extui %0 : i1 to i32
    %c0_i32_0 = arith.constant 0 : i32
    %2 = arith.cmpi ne, %1, %c0_i32_0 : i32
    scf.if %2 {
      %c0_49 = arith.constant 0 : index
      %c0_50 = arith.constant 0 : index
      %c0_51 = arith.constant 0 : index
      %114 = vector.load %arg2[%c0_49, %c0_50, %c0_51] : memref<1x8x32xf32, #tpu.memory_space<vmem>>, vector<1x8x32xf32>
      %115 = vector.shape_cast %114 : vector<1x8x32xf32> to vector<8x32xf32>
      %c0_52 = arith.constant 0 : index
      %c0_53 = arith.constant 0 : index
      %116 = vector.load %arg10[%c0_52, %c0_53] : memref<8x32xf32, #tpu.memory_space<vmem>>, vector<8x32xf32>
      tpu.vector_store %arg10[%c0_52, %c0_53], %115 {strides = array<i32>} : memref<8x32xf32, #tpu.memory_space<vmem>>, vector<8x32xf32>,
    } else {
    }
    %c0 = arith.constant 0 : index
    %c0_1 = arith.constant 0 : index
    %3 = vector.load %arg10[%c0, %c0_1] : memref<8x32xf32, #tpu.memory_space<vmem>>, vector<8x32xf32>
    %c0_2 = arith.constant 0 : index
    %c0_3 = arith.constant 0 : index
    %c0_4 = arith.constant 0 : index
    %4 = vector.load %arg3[%c0_2, %c0_3, %c0_4] : memref<1x5x32xf32, #tpu.memory_space<vmem>>, vector<1x5x32xf32>
    %5 = vector.shape_cast %4 : vector<1x5x32xf32> to vector<5x32xf32>
    %6 = vector.extract_strided_slice %5 {offsets = [0, 0], sizes = [1, 32], strides = [1, 1]} : vector<5x32xf32> to vector<1x32xf32>
    %7 = vector.extract_strided_slice %5 {offsets = [1, 0], sizes = [1, 32], strides = [1, 1]} : vector<5x32xf32> to vector<1x32xf32>
    %8 = vector.extract_strided_slice %5 {offsets = [2, 0], sizes = [1, 32], strides = [1, 1]} : vector<5x32xf32> to vector<1x32xf32>
    %9 = vector.extract_strided_slice %5 {offsets = [3, 0], sizes = [1, 32], strides = [1, 1]} : vector<5x32xf32> to vector<1x32xf32>
    %10 = vector.extract_strided_slice %5 {offsets = [4, 0], sizes = [1, 32], strides = [1, 1]} : vector<5x32xf32> to vector<1x32xf32>
    %cst = arith.constant dense<0.000000e+00> : vector<8xf32>
    %11 = vector.multi_reduction <add>, %3, %cst [1] : vector<8x32xf32> to vector<8xf32>
    %12 = vector.shape_cast %11 : vector<8xf32> to vector<8x1xf32>
    %cst_5 = arith.constant 3.200000e+01 : f32
    %13 = vector.broadcast %cst_5 : f32 to vector<8x1xf32>
    %14 = arith.divf %12, %13 : vector<8x1xf32>
    %15 = vector.broadcast %14 : vector<8x1xf32> to vector<8x32xf32>
    %16 = arith.subf %3, %15 : vector<8x32xf32>
    %17 = arith.mulf %16, %16 : vector<8x32xf32>
    %cst_6 = arith.constant dense<0.000000e+00> : vector<8xf32>
    %18 = vector.multi_reduction <add>, %17, %cst_6 [1] : vector<8x32xf32> to vector<8xf32>
    %19 = vector.shape_cast %18 : vector<8xf32> to vector<8x1xf32>
    %cst_7 = arith.constant 3.200000e+01 : f32
    %20 = vector.broadcast %cst_7 : f32 to vector<8x1xf32>
    %21 = arith.divf %19, %20 : vector<8x1xf32>
    %cst_8 = arith.constant 9.99999974E-6 : f32
    %22 = vector.broadcast %cst_8 : f32 to vector<8x1xf32>
    %23 = arith.addf %21, %22 : vector<8x1xf32>
    %24 = math.rsqrt %23 : vector<8x1xf32>
    %25 = vector.broadcast %24 : vector<8x1xf32> to vector<8x32xf32>
    %26 = arith.mulf %16, %25 : vector<8x32xf32>
    %27 = vector.broadcast %6 : vector<1x32xf32> to vector<8x32xf32>
    %28 = arith.mulf %26, %27 : vector<8x32xf32>
    %29 = vector.broadcast %7 : vector<1x32xf32> to vector<8x32xf32>
    %30 = arith.addf %28, %29 : vector<8x32xf32>
    %31 = vector.shape_cast %30 : vector<8x32xf32> to vector<1x8x32xf32>
    %32 = vector.shape_cast %31 : vector<1x8x32xf32> to vector<1x8x32xf32>
    %33 = vector.broadcast %32 : vector<1x8x32xf32> to vector<4x8x32xf32>
    %c0_9 = arith.constant 0 : index
    %c0_10 = arith.constant 0 : index
    %c0_11 = arith.constant 0 : index
    %c0_12 = arith.constant 0 : index
    %c0_13 = arith.constant 0 : index
    %34 = vector.load %arg5[%c0_9, %c0_10, %c0_11, %c0_12, %c0_13] : memref<1x3x4x32x8xf32, #tpu.memory_space<vmem>>, vector<1x3x4x32x8xf32>
    %35 = vector.shape_cast %34 : vector<1x3x4x32x8xf32> to vector<3x4x32x8xf32>
    %36 = vector.extract_strided_slice %35 {offsets = [0, 0, 0, 0], sizes = [1, 4, 32, 8], strides = [1, 1, 1, 1]} : vector<3x4x32x8xf32> to vector<1x4x32x8xf32>
    %37 = vector.shape_cast %36 : vector<1x4x32x8xf32> to vector<4x32x8xf32>
    "tpu.trace_start"() <{level = 10 : i32, message = "hnd,hdk->hnk"}> : () -> ()
    %cst_14 = arith.constant dense<0.000000e+00> : vector<4x8x8xf32>
    %38 = tpu.matmul %33, %37, %cst_14 {dimension_numbers = #tpu.dot_dimension_numbers<[2], [1], [1], [2], [0, 0, 0, 1, 1, 2], [0], [0]>} : vector<4x8x32xf32>, vector<4x32x8xf32>, vector<4x8x8xf32> -> vector<4x8x8xf32>
    "tpu.trace_stop"() : () -> ()
    %39 = vector.extract_strided_slice %35 {offsets = [1, 0, 0, 0], sizes = [1, 4, 32, 8], strides = [1, 1, 1, 1]} : vector<3x4x32x8xf32> to vector<1x4x32x8xf32>
    %40 = vector.shape_cast %39 : vector<1x4x32x8xf32> to vector<4x32x8xf32>
    "tpu.trace_start"() <{level = 10 : i32, message = "hnd,hdk->hnk"}> : () -> ()
    %cst_15 = arith.constant dense<0.000000e+00> : vector<4x8x8xf32>
    %41 = tpu.matmul %33, %40, %cst_15 {dimension_numbers = #tpu.dot_dimension_numbers<[2], [1], [1], [2], [0, 0, 0, 1, 1, 2], [0], [0]>} : vector<4x8x32xf32>, vector<4x32x8xf32>, vector<4x8x8xf32> -> vector<4x8x8xf32>
    "tpu.trace_stop"() : () -> ()
    %42 = vector.extract_strided_slice %35 {offsets = [2, 0, 0, 0], sizes = [1, 4, 32, 8], strides = [1, 1, 1, 1]} : vector<3x4x32x8xf32> to vector<1x4x32x8xf32>
    %43 = vector.shape_cast %42 : vector<1x4x32x8xf32> to vector<4x32x8xf32>
    "tpu.trace_start"() <{level = 10 : i32, message = "hnd,hdk->hnk"}> : () -> ()
    %cst_16 = arith.constant dense<0.000000e+00> : vector<4x8x8xf32>
    %44 = tpu.matmul %33, %43, %cst_16 {dimension_numbers = #tpu.dot_dimension_numbers<[2], [1], [1], [2], [0, 0, 0, 1, 1, 2], [0], [0]>} : vector<4x8x32xf32>, vector<4x32x8xf32>, vector<4x8x8xf32> -> vector<4x8x8xf32>
    "tpu.trace_stop"() : () -> ()
    "tpu.trace_start"() <{level = 10 : i32, message = "hnd,hmd->hnm"}> : () -> ()
    %cst_17 = arith.constant dense<0.000000e+00> : vector<4x8x8xf32>
    %45 = tpu.matmul %38, %41, %cst_17 {dimension_numbers = #tpu.dot_dimension_numbers<[2], [2], [1], [1], [0, 0, 0, 1, 1, 1], [0], [0]>} : vector<4x8x8xf32>, vector<4x8x8xf32>, vector<4x8x8xf32> -> vector<4x8x8xf32>
    "tpu.trace_stop"() : () -> ()
    %cst_18 = arith.constant dense<0xFF800000> : vector<4x8xf32>
    %46 = vector.multi_reduction <maximumf>, %45, %cst_18 [2] : vector<4x8x8xf32> to vector<4x8xf32>
    %47 = vector.shape_cast %46 : vector<4x8xf32> to vector<4x8x1xf32>
    %48 = vector.broadcast %47 : vector<4x8x1xf32> to vector<4x8x8xf32>
    %49 = arith.subf %45, %48 : vector<4x8x8xf32>
    %50 = math.exp %49 : vector<4x8x8xf32>
    %cst_19 = arith.constant dense<0.000000e+00> : vector<4x8xf32>
    %51 = vector.multi_reduction <add>, %50, %cst_19 [2] : vector<4x8x8xf32> to vector<4x8xf32>
    %52 = vector.shape_cast %51 : vector<4x8xf32> to vector<4x8x1xf32>
    %53 = vector.broadcast %52 : vector<4x8x1xf32> to vector<4x8x8xf32>
    %54 = arith.divf %50, %53 : vector<4x8x8xf32>
    "tpu.trace_start"() <{level = 10 : i32, message = "hnm,hmd->hnd"}> : () -> ()
    %cst_20 = arith.constant dense<0.000000e+00> : vector<4x8x8xf32>
    %55 = tpu.matmul %54, %44, %cst_20 {dimension_numbers = #tpu.dot_dimension_numbers<[2], [1], [1], [2], [0, 0, 0, 1, 1, 2], [0], [0]>} : vector<4x8x8xf32>, vector<4x8x8xf32>, vector<4x8x8xf32> -> vector<4x8x8xf32>
    "tpu.trace_stop"() : () -> ()
    %56 = vector.extract_strided_slice %55 {offsets = [0, 0, 0], sizes = [1, 8, 8], strides = [1, 1, 1]} : vector<4x8x8xf32> to vector<1x8x8xf32>
    %57 = vector.shape_cast %56 : vector<1x8x8xf32> to vector<8x8xf32>
    %58 = vector.extract_strided_slice %55 {offsets = [1, 0, 0], sizes = [1, 8, 8], strides = [1, 1, 1]} : vector<4x8x8xf32> to vector<1x8x8xf32>
    %59 = vector.shape_cast %58 : vector<1x8x8xf32> to vector<8x8xf32>
    %60 = vector.extract_strided_slice %55 {offsets = [2, 0, 0], sizes = [1, 8, 8], strides = [1, 1, 1]} : vector<4x8x8xf32> to vector<1x8x8xf32>
    %61 = vector.shape_cast %60 : vector<1x8x8xf32> to vector<8x8xf32>
    %62 = vector.extract_strided_slice %55 {offsets = [3, 0, 0], sizes = [1, 8, 8], strides = [1, 1, 1]} : vector<4x8x8xf32> to vector<1x8x8xf32>
    %63 = vector.shape_cast %62 : vector<1x8x8xf32> to vector<8x8xf32>
    %64 = tpu.concatenate %57, %59, %61, %63 in 1 : vector<8x8xf32>, vector<8x8xf32>, vector<8x8xf32>, vector<8x8xf32> -> vector<8x32xf32>
    %c0_21 = arith.constant 0 : index
    %c0_22 = arith.constant 0 : index
    %c0_23 = arith.constant 0 : index
    %65 = vector.load %arg6[%c0_21, %c0_22, %c0_23] : memref<1x32x32xf32, #tpu.memory_space<vmem>>, vector<1x32x32xf32>
    %66 = vector.shape_cast %65 : vector<1x32x32xf32> to vector<32x32xf32>
    %cst_24 = arith.constant dense<0.000000e+00> : vector<8x32xf32>
    %67 = tpu.matmul %64, %66, %cst_24 {dimension_numbers = #tpu.dot_dimension_numbers<[1], [0], [0], [1], [0, 0, 1, 1], [], []>} : vector<8x32xf32>, vector<32x32xf32>, vector<8x32xf32> -> vector<8x32xf32>
    %68 = arith.addf %67, %3 : vector<8x32xf32>
    %cst_25 = arith.constant dense<0.000000e+00> : vector<8xf32>
    %69 = vector.multi_reduction <add>, %68, %cst_25 [1] : vector<8x32xf32> to vector<8xf32>
    %70 = vector.shape_cast %69 : vector<8xf32> to vector<8x1xf32>
    %cst_26 = arith.constant 3.200000e+01 : f32
    %71 = vector.broadcast %cst_26 : f32 to vector<8x1xf32>
    %72 = arith.divf %70, %71 : vector<8x1xf32>
    %73 = vector.broadcast %72 : vector<8x1xf32> to vector<8x32xf32>
    %74 = arith.subf %68, %73 : vector<8x32xf32>
    %75 = arith.mulf %74, %74 : vector<8x32xf32>
    %cst_27 = arith.constant dense<0.000000e+00> : vector<8xf32>
    %76 = vector.multi_reduction <add>, %75, %cst_27 [1] : vector<8x32xf32> to vector<8xf32>
    %77 = vector.shape_cast %76 : vector<8xf32> to vector<8x1xf32>
    %cst_28 = arith.constant 3.200000e+01 : f32
    %78 = vector.broadcast %cst_28 : f32 to vector<8x1xf32>
    %79 = arith.divf %77, %78 : vector<8x1xf32>
    %cst_29 = arith.constant 9.99999974E-6 : f32
    %80 = vector.broadcast %cst_29 : f32 to vector<8x1xf32>
    %81 = arith.addf %79, %80 : vector<8x1xf32>
    %82 = math.rsqrt %81 : vector<8x1xf32>
    %83 = vector.broadcast %82 : vector<8x1xf32> to vector<8x32xf32>
    %84 = arith.mulf %74, %83 : vector<8x32xf32>
    %85 = vector.broadcast %8 : vector<1x32xf32> to vector<8x32xf32>
    %86 = arith.mulf %84, %85 : vector<8x32xf32>
    %87 = vector.broadcast %9 : vector<1x32xf32> to vector<8x32xf32>
    %88 = arith.addf %86, %87 : vector<8x32xf32>
    %c0_30 = arith.constant 0 : index
    %c0_31 = arith.constant 0 : index
    %c0_32 = arith.constant 0 : index
    %89 = vector.load %arg7[%c0_30, %c0_31, %c0_32] : memref<1x32x64xf32, #tpu.memory_space<vmem>>, vector<1x32x64xf32>
    %90 = vector.shape_cast %89 : vector<1x32x64xf32> to vector<32x64xf32>
    %cst_33 = arith.constant dense<0.000000e+00> : vector<8x64xf32>
    %91 = tpu.matmul %88, %90, %cst_33 {dimension_numbers = #tpu.dot_dimension_numbers<[1], [0], [0], [1], [0, 0, 1, 1], [], []>} : vector<8x32xf32>, vector<32x64xf32>, vector<8x64xf32> -> vector<8x64xf32>
    %c0_34 = arith.constant 0 : index
    %c0_35 = arith.constant 0 : index
    %c0_36 = arith.constant 0 : index
    %92 = vector.load %arg4[%c0_34, %c0_35, %c0_36] : memref<1x1x64xf32, #tpu.memory_space<vmem>>, vector<1x1x64xf32>
    %93 = vector.shape_cast %92 : vector<1x1x64xf32> to vector<1x64xf32>
    %94 = vector.broadcast %93 : vector<1x64xf32> to vector<8x64xf32>
    %95 = arith.addf %91, %94 : vector<8x64xf32>
    %cst_37 = arith.constant 5.000000e-01 : f32
    %96 = vector.broadcast %cst_37 : f32 to vector<8x64xf32>
    %97 = arith.mulf %96, %95 : vector<8x64xf32>
    %cst_38 = arith.constant 0.707106769 : f32
    %98 = vector.broadcast %cst_38 : f32 to vector<8x64xf32>
    %99 = arith.mulf %95, %98 : vector<8x64xf32>
    %100 = math.erf %99 : vector<8x64xf32>
    %cst_39 = arith.constant 1.000000e+00 : f32
    %101 = vector.broadcast %cst_39 : f32 to vector<8x64xf32>
    %102 = arith.addf %101, %100 : vector<8x64xf32>
    %103 = arith.mulf %97, %102 : vector<8x64xf32>
    %c0_40 = arith.constant 0 : index
    %c0_41 = arith.constant 0 : index
    %c0_42 = arith.constant 0 : index
    %104 = vector.load %arg8[%c0_40, %c0_41, %c0_42] : memref<1x64x32xf32, #tpu.memory_space<vmem>>, vector<1x64x32xf32>
    %105 = vector.shape_cast %104 : vector<1x64x32xf32> to vector<64x32xf32>
    %cst_43 = arith.constant dense<0.000000e+00> : vector<8x32xf32>
    %106 = tpu.matmul %103, %105, %cst_43 {dimension_numbers = #tpu.dot_dimension_numbers<[1], [0], [0], [1], [0, 0, 1, 1], [], []>} : vector<8x64xf32>, vector<64x32xf32>, vector<8x32xf32> -> vector<8x32xf32>
    %107 = vector.broadcast %10 : vector<1x32xf32> to vector<8x32xf32>
    %108 = arith.addf %106, %107 : vector<8x32xf32>
    %109 = arith.addf %108, %68 : vector<8x32xf32>
    %c0_44 = arith.constant 0 : index
    %c0_45 = arith.constant 0 : index
    %110 = vector.load %arg10[%c0_44, %c0_45] : memref<8x32xf32, #tpu.memory_space<vmem>>, vector<8x32xf32>
    tpu.vector_store %arg10[%c0_44, %c0_45], %109 {strides = array<i32>} : memref<8x32xf32, #tpu.memory_space<vmem>>, vector<8x32xf32>,
    %c0_46 = arith.constant 0 : index
    %c0_47 = arith.constant 0 : index
    %c0_48 = arith.constant 0 : index
    %111 = vector.load %arg9[%c0_46, %c0_47, %c0_48] : memref<1x8x32xf32, #tpu.memory_space<vmem>>, vector<1x8x32xf32>
    %112 = vector.shape_cast %111 : vector<1x8x32xf32> to vector<8x32xf32>
    %113 = vector.shape_cast %109 : vector<8x32xf32> to vector<1x8x32xf32>
    tpu.vector_store %arg9[%c0_46, %c0_47, %c0_48], %113 {strides = array<i32>} : memref<1x8x32xf32, #tpu.memory_space<vmem>>, vector<1x8x32xf32>,
    return
  }
  func.func @transform_0(%arg0: i32, %arg1: i32) -> (i32, i32, i32) {
    %c0_i32 = arith.constant 0 : i32
    %c0_i32_0 = arith.constant 0 : i32
    %c0_i32_1 = arith.constant 0 : i32
    return %arg0, %c0_i32, %c0_i32_0 : i32, i32, i32
  }
  func.func @transform_1(%arg0: i32, %arg1: i32) -> (i32, i32, i32) {
    %c0_i32 = arith.constant 0 : i32
    %c0_i32_0 = arith.constant 0 : i32
    %c0_i32_1 = arith.constant 0 : i32
    return %arg1, %c0_i32, %c0_i32_0 : i32, i32, i32
  }
  func.func @transform_2(%arg0: i32, %arg1: i32) -> (i32, i32, i32) {
    %c0_i32 = arith.constant 0 : i32
    %c0_i32_0 = arith.constant 0 : i32
    %c0_i32_1 = arith.constant 0 : i32
    return %arg1, %c0_i32, %c0_i32_0 : i32, i32, i32
  }
  func.func @transform_3(%arg0: i32, %arg1: i32) -> (i32, i32, i32, i32, i32) {
    %c0_i32 = arith.constant 0 : i32
    %c0_i32_0 = arith.constant 0 : i32
    %c0_i32_1 = arith.constant 0 : i32
    %c0_i32_2 = arith.constant 0 : i32
    %c0_i32_3 = arith.constant 0 : i32
    return %arg1, %c0_i32, %c0_i32_0, %c0_i32_1, %c0_i32_2 : i32, i32, i32, i32, i32
  }
  func.func @transform_4(%arg0: i32, %arg1: i32) -> (i32, i32, i32) {
    %c0_i32 = arith.constant 0 : i32
    %c0_i32_0 = arith.constant 0 : i32
    %c0_i32_1 = arith.constant 0 : i32
    return %arg1, %c0_i32, %c0_i32_0 : i32, i32, i32
  }
  func.func @transform_5(%arg0: i32, %arg1: i32) -> (i32, i32, i32) {
    %c0_i32 = arith.constant 0 : i32
    %c0_i32_0 = arith.constant 0 : i32
    %c0_i32_1 = arith.constant 0 : i32
    return %arg1, %c0_i32, %c0_i32_0 : i32, i32, i32
  }
  func.func @transform_6(%arg0: i32, %arg1: i32) -> (i32, i32, i32) {
    %c0_i32 = arith.constant 0 : i32
    %c0_i32_0 = arith.constant 0 : i32
    %c0_i32_1 = arith.constant 0 : i32
    return %arg1, %c0_i32, %c0_i32_0 : i32, i32, i32
  }
  func.func @transform_7(%arg0: i32, %arg1: i32) -> (i32, i32, i32) {
    %c0_i32 = arith.constant 0 : i32
    %c0_i32_0 = arith.constant 0 : i32
    %c0_i32_1 = arith.constant 0 : i32
    return %arg0, %c0_i32, %c0_i32_0 : i32, i32, i32
  }
}

</mosaic_0001>

<bundles_post_ra>
// kernel: transformer_forward.1
= control target key start
LH: loop header
LB: loop body
LE: loop exit
PB: predicated region body
PF: predicated region fallthrough
CT: control target
= control target key end

     0   :  { %s3456_s0 = inlined_call_operand.vmem [shape: f32[2,8,32], index: 0, kind: input, shape index: {}]   ;;  %s3457_s1 = inlined_call_operand.vmem [shape: f32[2,5,32], index: 1, kind: input, shape index: {}]   ;;  %s3458_s2 = inlined_call_operand.vmem [shape: f32[2,1,64], index: 2, kind: input, shape index: {}]   ;;  %s3459_s3 = inlined_call_operand.vmem [shape: f32[2,3,4,32,8], index: 3, kind: input, shape index: {}]   ;;  %s3460_s4 = inlined_call_operand.vmem [shape: f32[2,32,32], index: 4, kind: input, shape index: {}]   ;;  %s3461_s5 = inlined_call_operand.vmem [shape: f32[2,32,64], index: 5, kind: input, shape index: {}]   ;;  %s3462_s6 = inlined_call_operand.vmem [shape: f32[2,64,32], index: 6, kind: input, shape index: {}]   ;;  %s3463_s7 = inlined_call_operand.hbm [shape: f32[2,8,32], index: 7, kind: output, shape index: {}]  }
   0x1   :  { %3473 = sst [smem:[#allocation15_spill]] %s3456_s0 }
   0x2   :  { %12 = vsyncpa [#allocation4], 0 }
   0x3   :  { %14 = vsyncpa [#allocation4 + $0x1], 0  ;;  %s3009_s24 = smov 0   ;;  %s3011_s25 = smov 0  }
   0x4   :  { %s3013_s26 = smov 0   ;;  %s3015_s27 = smov 0  }
   0x5   :  { %s3017_s28 = smov 0   ;;  %s3019_s29 = smov 0  }
   0x6   :  { %s3021_s30 = smov 0   ;;  %s3023_s8 = smov 0  }
   0x7 LB: > { %3474 = sst [smem:[#allocation6_spill]] %s2933_s24  ;;  %s2411_s9 = sadd.s32 4294967295, %s2961_s8   ;;  %s2961_s8 = sphi %s3023_s8, %s20_s8   ;;  %s2957_s30 = sphi %s3021_s30, %s3496_s30   ;;  %s2953_s29 = sphi %s3019_s29, %s3499_s29   ;;  %s2949_s28 = sphi %s3017_s28, %s3494_s28   ;;  %s2945_s27 = sphi %s3015_s27, %s3493_s27   ;;  %s2941_s26 = sphi %s3013_s26, %s3492_s26   ;;  %s2937_s25 = sphi %s3011_s25, %s3498_s25   ;;  %s2933_s24 = sphi %s3009_s24, %s3497_s24  }
   0x8   : > { %3475 = sst [smem:[#allocation7_spill]] %s2941_s26  ;;  %s2412_s10 = sadd.s32 4294967294, %s2961_s8  }
   0x9   : > { %3476 = sst [smem:[#allocation8_spill]] %s2953_s29  ;;  %s29_s11 = sadd.s32 1, %s2953_s29 }
   0xa   : > { %3477 = sst [smem:[#allocation9_spill]] %s2957_s30  ;;  %p30_p0 = scmp.ge.s32.totalorder %s29_s11, 2 }
   0xb   : > { %3478 = sst [smem:[#allocation10_spill]] %s2961_s8  ;;  %s32_s12 = sadd.s32 1, %s2957_s30 }
   0xc   : > { %p231_p1 = scmp.ne.s32.totalorder %s2941_s26, %s2937_s25  ;;  %p232_p2 = scmp.eq.s32.totalorder %s2411_s9, 3 }
   0xd   : > { %s3501_s11 = smov (%p30_p0, %s29_s11), 0  ;;  %s3503_s12 = smov (!%p30_p0, %s32_s12), %s2957_s30 }
   0xe   : > { %3479 = sst [smem:[#allocation11_spill]] %s3501_s11  ;;  %p3058_p3 = por %p232_p2, %p231_p1 }
   0xf   : > { %p237_p4 = scmp.ne.s32.totalorder %s2937_s25, %s2933_s24  ;;  %p34_p5 = scmp.ge.s32.totalorder %s3503_s12, 2 }
  0x10   : > { %p238_p6 = scmp.eq.s32.totalorder %s2412_s10, 3  ;;  %p2415_p7 = scmp.ge.s32.totalorder %s2961_s8, 1 }
  0x11   : > { %p308_p8 = scmp.lt.s32.totalorder %s2961_s8, 5  ;;  %s3505_s12 = smov (%p34_p5, %s3503_s12), 0 }
  0x12   : > { %3481 = sst [smem:[#allocation12_spill]] %s3505_s12  ;;  %p3068_p9 = por %p238_p6, %p237_p4 }
  0x13   : > { %p309_p10 = pnand %p2415_p7, %p308_p8  ;;  %s218_s15 = ssub.s32 %s2957_s30, %s3505_s12 }
  0x14   : > { %s3482_s14 = scalar_select %p3068_p9, 1, 0 }
  0x15   : > { %s221_s16 = sadd.s32 1, %s2941_s26  ;;  %p219_p11 = scmp.eq.s32.totalorder %s218_s15, 0 }
  0x16   : > { %3483 = sst [smem:[#allocation13_spill]] %s3482_s14  ;;  %312 = sbr.rel (%p309_p10) target bundleno = 2334 (0x91e), region = 48 }
  0x17   : > { %s3076_s17 = scalar_select %p219_p11, %s2941_s26, %s221_s16  }
  0x18   : > { %s3465_s18 = sand.u32 (!%p309_p10), 1, %s2937_s25   ;;  %p366_p12 = scmp.lt.s32.totalorder (!%p309_p10), %s2949_s28, 1 }
  0x19   : > { %3484 = sst [smem:[#allocation14_spill]] %s3076_s17  ;;  %s3082_s19 = sshll.u32 (!%p309_p10), %s3465_s18, 3 }
  0x1a   : > { %p370_p13 = scmp.lt.s32.totalorder (!%p309_p10), %s2945_s27, 1  ;;  %s3485_s0 = sld [smem:[#allocation15_spill]] (!%p309_p10) }
  0x1b   : > { %s367_s20 = scalar_select %p366_p12, %s2949_s28, 1 }
  0x1c   : > { %s3087_s21 = scalar_select %p370_p13, %s2945_s27, 1 }
  0x1d   : > { %s2417_s22 = sshll.u32 %s367_s20, 3  ;;  %p2426_p0 = scmp.ne.s32.totalorder %s2945_s27, 0 }
  0x1e   : > { %s2418_s15 = sshll.u32 %s3087_s21, 3  ;;  %s2770_s17 = smul.u32 384, %s3087_s21 }
  0x1f   : > { %s3096_s18 = scalar_lea.vmem %s3457_s1, %s2418_s15  ;;  %s2459_s26 = sshll.u32 %s3087_s21, 5 }
  0x20   : > { %s369_s10 = scalar_lea.vmem %s3485_s0, %s2417_s22  ;;  %s3107_s20 = scalar_lea.vmem %s3460_s4, %s2459_s26 }
  0x21   : > { %s3112_s22 = scalar_lea.vmem %s3461_s5, %s2459_s26  ;;  %s3117_s15 = scalar_lea.vmem %s3459_s3, %s2770_s17 }
  0x22   : > { %s2461_s16 = sshll.u32 %s3087_s21, 6  ;;  %s365_s0 = scalar_lea.vmem [#allocation3], %s3082_s19 }
  0x23   : > { %s3123_s29 = scalar_lea.vmem %s3462_s6, %s2461_s16  ;;  %400 = sbr.rel (%p2426_p0) target bundleno = 42 (0x2a), region = 52 }
  0x28   : > { %v401_v0 = vld [vmem:[%s369_s10] sm:$0xff]  ;;  %vm402_vm0 = vcmask 261120  }
  0x29   : > { %403 = vst.msk [vmem:[#allocation2] sm:$0xff] %vm402_vm0, %v401_v0 }
  0x2a PF: > { %vm406_vm1 = vcmask 261120   ;;  %v2963_v8 = vmov 0.0   ;;  %v434_v9 = vld [vmem:[%s3117_s15 + $0x18] sm:$0xff]  ;;  %v433_v11 = vld [vmem:[%s3117_s15 + $0x10] sm:$0xff]  ;;  %v432_v13 = vld [vmem:[%s3117_s15 + $0x8] sm:$0xff]  ;;  %vm2964_vm2 = vmmov 0   ;;  %v421_v20 = vlaneseq  ;;  %s3486_s17 = scalar_lea.vmem %s3458_s2, %s3087_s21 }
  0x2b   : > { %2557 = vmatprep.subr.mxu1 %v2963_v8  ;;  %2579 = vmatprep.subr.mxu0 %v2963_v8  ;;  %v442_v10 = vld [vmem:[%s3117_s15 + $0x58] sm:$0xff]  ;;  %v441_v12 = vld [vmem:[%s3117_s15 + $0x50] sm:$0xff]  ;;  %v440_v14 = vld [vmem:[%s3117_s15 + $0x48] sm:$0xff]  ;;  %vm1322_vm3 = vcmask 64512   ;;  %s2965_s24 = smov 16   ;;  %s2966_s26 = smov 8  }
  0x2c   : > { %2558 = vmatpush3.msra.mxu1 %v434_v9  ;;  %2580 = vmatpush3.msra.mxu0 %v442_v10  ;;  %v431_v15 = vld [vmem:[%s3117_s15] sm:$0xff]  ;;  %v3155_v21 = vshrl.u32 %v421_v20, 7  ;;  %v438_v31 = vld [vmem:[%s3117_s15 + $0x38] sm:$0xff]  ;;  %v437_v33 = vld [vmem:[%s3117_s15 + $0x30] sm:$0xff]  ;;  %s2967_s27 = smov 24   ;;  %vm1976_vm4 = vcmask 130048  }
  0x2d   : > { %2559 = vmatprep.subr.mxu1 %v2963_v8  ;;  %2581 = vmatprep.subr.mxu0 %v2963_v8  ;;  %v439_v16 = vld [vmem:[%s3117_s15 + $0x40] sm:$0xff]  ;;  %v450_v32 = vld [vmem:[%s3117_s15 + $0x98] sm:$0xff]  ;;  %v449_v34 = vld [vmem:[%s3117_s15 + $0x90] sm:$0xff]  ;;  %vm1978_vm5 = vcmask 195584   ;;  %vm2181_vm6 = vcmask 523264   ;;  %s3487_s23 = sand.u32 1, %s2937_s25  }
  0x2e   : > { %2560 = vmatpush3.msra.mxu1 %v433_v11  ;;  %2582 = vmatpush3.msra.mxu0 %v441_v12  ;;  %v423_v22 = vsub.s32 0, %v3155_v21  ;;  %v3159_v23 = vld [vmem:[%s3096_s18] sm:$0x1f]  ;;  %v428_v24 = vsub.s32 1, %v3155_v21  ;;  %v436_v35 = vld [vmem:[%s3117_s15 + $0x28] sm:$0xff]  ;;  %v446_v39 = vld [vmem:[%s3117_s15 + $0x78] sm:$0xff] }
  0x2f   : > { %2561 = vmatprep.subr.mxu1 %v2963_v8  ;;  %2583 = vmatprep.subr.mxu0 %v2963_v8  ;;  %v448_v36 = vld [vmem:[%s3117_s15 + $0x88] sm:$0xff]  ;;  %v435_v37 = vld [vmem:[%s3117_s15 + $0x20] sm:$0xff]  ;;  %v458_v40 = vld [vmem:[%s3117_s15 + $0xd8] sm:$0xff]  ;;  %s2272_s18 = sshll.u32 %s365_s0, 4  ;;  %s2968_s9 = smov [#allocation3]   ;;  %s2273_s18 = int_to_ptr.vmem [resolvable:$true] %s2272_s18 }
  0x30   : > { %v3127_v1 = vld [vmem:[#allocation2] sm:$0xff]  ;;  %2562 = vmatpush3.msra.mxu1 %v432_v13  ;;  %2584 = vmatpush3.msra.mxu0 %v440_v14  ;;  %v424_v25 = vrot.slane %v3159_v23, %v423_v22  ;;  %v429_v27 = vrot.slane %v3159_v23, %v428_v24  ;;  %v445_v41 = vld [vmem:[%s3117_s15 + $0x70] sm:$0xff]  ;;  %v444_v43 = vld [vmem:[%s3117_s15 + $0x68] sm:$0xff]  ;;  %s2873_s12 = sshll.u32 %s2968_s9, 4  ;;  %s2874_s12 = int_to_ptr.vmem [resolvable:$false] %s2873_s12 }
  0x31   : > { %v407_v2 = vsel %vm406_vm1, %v3127_v1, 0.0  ;;  %2563 = vmatprep.subr.mxu1 %v2963_v8  ;;  %2585 = vmatprep.subr.mxu0 %v2963_v8  ;;  %v447_v38 = vld [vmem:[%s3117_s15 + $0x80] sm:$0xff]  ;;  %v457_v42 = vld [vmem:[%s3117_s15 + $0xd0] sm:$0xff]  ;;  %v456_v44 = vld [vmem:[%s3117_s15 + $0xc8] sm:$0xff]  ;;  %p2876_p5 = scmp.lt.s32.totalorder %s2273_s18, %s2874_s12 }
  0x32   : > { %408 = vadd.xlane.f32.xlu0 %v407_v2  ;;  %2564 = vmatpush3.msra.mxu1 %v431_v15  ;;  %v443_v45 = vld [vmem:[%s3117_s15 + $0x60] sm:$0xff]  ;;  %v454_v47 = vld [vmem:[%s3117_s15 + $0xb8] sm:$0xff]  ;;  %v453_v49 = vld [vmem:[%s3117_s15 + $0xb0] sm:$0xff] }
  0x33   : > { %2586 = vmatpush3.msra.mxu0 %v439_v16  ;;  %2565 = vmatprep.mubr.msk.f32.mxu1 %vm2964_vm2, %v2963_v8  ;;  %v455_v46 = vld [vmem:[%s3117_s15 + $0xc0] sm:$0xff]  ;;  %v466_v48 = vld [vmem:[%s3117_s15 + $0x118] sm:$0xff]  ;;  %v465_v50 = vld [vmem:[%s3117_s15 + $0x110] sm:$0xff] }
  0x34   : > { %2568 = vmatprep.subr.mxu1 %v2963_v8  ;;  %2587 = vmatprep.mubr.msk.f32.mxu0 %vm2964_vm2, %v2963_v8  ;;  %v452_v51 = vld [vmem:[%s3117_s15 + $0xa8] sm:$0xff]  ;;  %v451_v53 = vld [vmem:[%s3117_s15 + $0xa0] sm:$0xff]  ;;  %v462_v55 = vld [vmem:[%s3117_s15 + $0xf8] sm:$0xff] }
  0x35   : > { %2601 = vmatprep.subr.mxu0 %v2963_v8  ;;  %v464_v52 = vld [vmem:[%s3117_s15 + $0x108] sm:$0xff]  ;;  %v463_v54 = vld [vmem:[%s3117_s15 + $0x100] sm:$0xff]  ;;  %v474_v56 = vld [vmem:[%s3117_s15 + $0x158] sm:$0xff] }
  0x36   : > { %v461_v57 = vld [vmem:[%s3117_s15 + $0xf0] sm:$0xff]  ;;  %v460_v59 = vld [vmem:[%s3117_s15 + $0xe8] sm:$0xff]  ;;  %v459_v61 = vld [vmem:[%s3117_s15 + $0xe0] sm:$0xff] }
  0x37   : > { %v473_v58 = vld [vmem:[%s3117_s15 + $0x150] sm:$0xff]  ;;  %v472_v60 = vld [vmem:[%s3117_s15 + $0x148] sm:$0xff]  ;;  %v471_v62 = vld [vmem:[%s3117_s15 + $0x140] sm:$0xff] }
  0x38   : > { %v470_v63 = vld [vmem:[%s3117_s15 + $0x138] sm:$0xff]  ;;  %v469_v0 = vld [vmem:[%s3117_s15 + $0x130] sm:$0xff]  ;;  %v468_v2 = vld [vmem:[%s3117_s15 + $0x128] sm:$0xff] }
  0xbb   : > { %v409_v3 = vpop.xlane.xlu0 %408 }
  0xbc   : > { %v411_v4 = vmul.f32 0.03125, %v409_v3  ;;  %v467_v3 = vld [vmem:[%s3117_s15 + $0x120] sm:$0xff] }
  0xbe   : > { %v412_v5 = vsub.f32 %v3127_v1, %v411_v4  ;;  %v478_v4 = vld [vmem:[%s3117_s15 + $0x178] sm:$0xff] }
  0xc0   : > { %v413_v6 = vmul.f32 %v412_v5, %v412_v5 }
  0xc2   : > { %v414_v7 = vsel %vm406_vm1, %v413_v6, 0.0  ;;  %v476_v6 = vld [vmem:[%s3117_s15 + $0x168] sm:$0xff] }
  0xc3   : > { %415 = vadd.xlane.f32.xlu0 %v414_v7  ;;  %v475_v7 = vld [vmem:[%s3117_s15 + $0x160] sm:$0xff] }
 0x14c   : > { %v416_v17 = vpop.xlane.xlu0 %415 }
 0x14d   : > { %v417_v18 = vmul.f32 0.03125, %v416_v17 }
 0x14f   : > { %v418_v19 = vadd.f32 1e-05, %v417_v18 }
 0x151   : > { %2847 = vrsqrt.f32 %v418_v19 }
 0x15e   : > { %v2848_v26 = vpop.eup %2847 }
 0x15f   : > { %v420_v28 = vmul.f32 %v2848_v26, %v412_v5  ;;  %v477_v5 = vld [vmem:[%s3117_s15 + $0x170] sm:$0xff]  ;;  %s2875_s15 = scalar_lea.vmem %s2874_s12, 256 }
 0x161   : > { %v425_v29 = vmul.f32 %v424_v25, %v420_v28 }
 0x163   : > { %v3164_v30 = vadd.f32 %v429_v27, %v425_v29 }
 0x165   : > { %2566 = vmatmul.mubr.msk.f32.vlgmr.msra.gmra.mxu1 %vm406_vm1, %v3164_v30  ;;  %2588 = vmatmul.mubr.msk.f32.vlgmr.msra.gmra.mxu0 %vm406_vm1, %v3164_v30 }
 0x166   : > { %2569 = vmatpush3.msra.mxu1 %v438_v31  ;;  %2602 = vmatpush3.msra.mxu0 %v450_v32 }
 0x167   : > { %2570 = vmatprep.subr.mxu1 %v2963_v8  ;;  %2603 = vmatprep.subr.mxu0 %v2963_v8 }
 0x168   : > { %2571 = vmatpush3.msra.mxu1 %v437_v33  ;;  %2604 = vmatpush3.msra.mxu0 %v449_v34 }
 0x169   : > { %2572 = vmatprep.subr.mxu1 %v2963_v8  ;;  %2605 = vmatprep.subr.mxu0 %v2963_v8 }
 0x16a   : > { %2573 = vmatpush3.msra.mxu1 %v436_v35  ;;  %2606 = vmatpush3.msra.mxu0 %v448_v36 }
 0x16b   : > { %2574 = vmatprep.subr.mxu1 %v2963_v8  ;;  %2607 = vmatprep.subr.mxu0 %v2963_v8 }
 0x16c   : > { %2575 = vmatpush3.msra.mxu1 %v435_v37  ;;  %2576 = vmatprep.mubr.msk.f32.mxu1 %vm2964_vm2, %v2963_v8 }
 0x16d   : > { %2608 = vmatpush3.msra.mxu0 %v447_v38  ;;  %2609 = vmatprep.mubr.msk.f32.mxu0 %vm2964_vm2, %v2963_v8 }
 0x16e   : > { %2577 = vmatmul.mubr.msk.f32.vlgmr.msra.gmra.mxu1 %vm406_vm1, %v3164_v30  ;;  %2590 = vmatprep.subr.mxu1 %v2963_v8 }
 0x16f   : > { %2610 = vmatmul.mubr.msk.f32.vlgmr.msra.gmra.mxu0 %vm406_vm1, %v3164_v30  ;;  %2623 = vmatprep.subr.mxu0 %v2963_v8 }
 0x170   : > { %2591 = vmatpush3.msra.mxu1 %v446_v39  ;;  %2624 = vmatpush3.msra.mxu0 %v458_v40 }
 0x171   : > { %2592 = vmatprep.subr.mxu1 %v2963_v8  ;;  %2625 = vmatprep.subr.mxu0 %v2963_v8 }
 0x172   : > { %2593 = vmatpush3.msra.mxu1 %v445_v41  ;;  %2626 = vmatpush3.msra.mxu0 %v457_v42 }
 0x173   : > { %2594 = vmatprep.subr.mxu1 %v2963_v8  ;;  %2627 = vmatprep.subr.mxu0 %v2963_v8 }
 0x174   : > { %2595 = vmatpush3.msra.mxu1 %v444_v43  ;;  %2628 = vmatpush3.msra.mxu0 %v456_v44 }
 0x175   : > { %2596 = vmatprep.subr.mxu1 %v2963_v8  ;;  %2629 = vmatprep.subr.mxu0 %v2963_v8 }
 0x176   : > { %2597 = vmatpush3.msra.mxu1 %v443_v45  ;;  %2598 = vmatprep.mubr.msk.f32.mxu1 %vm2964_vm2, %v2963_v8 }
 0x177   : > { %2630 = vmatpush3.msra.mxu0 %v455_v46  ;;  %2631 = vmatprep.mubr.msk.f32.mxu0 %vm2964_vm2, %v2963_v8 }
 0x178   : > { %2599 = vmatmul.mubr.msk.f32.vlgmr.msra.gmra.mxu1 %vm406_vm1, %v3164_v30  ;;  %2612 = vmatprep.subr.mxu1 %v2963_v8 }
 0x179   : > { %2632 = vmatmul.mubr.msk.f32.vlgmr.msra.gmra.mxu0 %vm406_vm1, %v3164_v30  ;;  %2645 = vmatprep.subr.mxu0 %v2963_v8 }
 0x17a   : > { %2613 = vmatpush3.msra.mxu1 %v454_v47  ;;  %2646 = vmatpush3.msra.mxu0 %v466_v48 }
 0x17b   : > { %2614 = vmatprep.subr.mxu1 %v2963_v8  ;;  %2647 = vmatprep.subr.mxu0 %v2963_v8 }
 0x17c   : > { %2615 = vmatpush3.msra.mxu1 %v453_v49  ;;  %2648 = vmatpush3.msra.mxu0 %v465_v50 }
 0x17d   : > { %2616 = vmatprep.subr.mxu1 %v2963_v8  ;;  %2649 = vmatprep.subr.mxu0 %v2963_v8 }
 0x17e   : > { %2617 = vmatpush3.msra.mxu1 %v452_v51  ;;  %2650 = vmatpush3.msra.mxu0 %v464_v52 }
 0x17f   : > { %2618 = vmatprep.subr.mxu1 %v2963_v8  ;;  %2651 = vmatprep.subr.mxu0 %v2963_v8 }
 0x180   : > { %2619 = vmatpush3.msra.mxu1 %v451_v53  ;;  %2620 = vmatprep.mubr.msk.f32.mxu1 %vm2964_vm2, %v2963_v8 }
 0x181   : > { %2652 = vmatpush3.msra.mxu0 %v463_v54  ;;  %2653 = vmatprep.mubr.msk.f32.mxu0 %vm2964_vm2, %v2963_v8 }
 0x182   : > { %2621 = vmatmul.mubr.msk.f32.vlgmr.msra.gmra.mxu1 %vm406_vm1, %v3164_v30  ;;  %2634 = vmatprep.subr.mxu1 %v2963_v8 }
 0x183   : > { %2654 = vmatmul.mubr.msk.f32.vlgmr.msra.gmra.mxu0 %vm406_vm1, %v3164_v30  ;;  %2667 = vmatprep.subr.mxu0 %v2963_v8 }
 0x184   : > { %2635 = vmatpush3.msra.mxu1 %v462_v55  ;;  %2668 = vmatpush3.msra.mxu0 %v474_v56 }
 0x185   : > { %2636 = vmatprep.subr.mxu1 %v2963_v8  ;;  %2669 = vmatprep.subr.mxu0 %v2963_v8 }
 0x186   : > { %2637 = vmatpush3.msra.mxu1 %v461_v57  ;;  %2670 = vmatpush3.msra.mxu0 %v473_v58 }
 0x187   : > { %2638 = vmatprep.subr.mxu1 %v2963_v8  ;;  %2671 = vmatprep.subr.mxu0 %v2963_v8 }
 0x188   : > { %2639 = vmatpush3.msra.mxu1 %v460_v59  ;;  %2672 = vmatpush3.msra.mxu0 %v472_v60 }
 0x189   : > { %2640 = vmatprep.subr.mxu1 %v2963_v8  ;;  %2673 = vmatprep.subr.mxu0 %v2963_v8 }
 0x18a   : > { %2641 = vmatpush3.msra.mxu1 %v459_v61  ;;  %2642 = vmatprep.mubr.msk.f32.mxu1 %vm2964_vm2, %v2963_v8 }
 0x18b   : > { %2674 = vmatpush3.msra.mxu0 %v471_v62  ;;  %2675 = vmatprep.mubr.msk.f32.mxu0 %vm2964_vm2, %v2963_v8 }
 0x18c   : > { %2643 = vmatmul.mubr.msk.f32.vlgmr.msra.gmra.mxu1 %vm406_vm1, %v3164_v30  ;;  %2656 = vmatprep.subr.mxu1 %v2963_v8 }
 0x18d   : > { %2676 = vmatmul.mubr.msk.f32.vlgmr.msra.gmra.mxu0 %vm406_vm1, %v3164_v30  ;;  %2657 = vmatpush3.msra.mxu1 %v470_v63 }
 0x18e   : > { %2658 = vmatprep.subr.mxu1 %v2963_v8  ;;  %2664 = vmatprep.mubr.msk.f32.mxu1 %vm2964_vm2, %v2963_v8 }
 0x18f   : > { %2659 = vmatpush3.msra.mxu1 %v469_v0  ;;  %2689 = vmatprep.subr.mxu0 %v2963_v8 }
 0x190   : > { %2660 = vmatprep.subr.mxu1 %v2963_v8  ;;  %2691 = vmatprep.mubr.msk.f32.mxu0 %vm2964_vm2, %v2963_v8 }
 0x191   : > { %2661 = vmatpush3.msra.mxu1 %v468_v2 }
 0x192   : > { %2662 = vmatprep.subr.mxu1 %v2963_v8 }
 0x193   : > { %2663 = vmatpush3.msra.mxu1 %v467_v3 }
 0x194   : > { %2665 = vmatmul.mubr.msk.f32.vlgmr.msra.gmra.mxu1 %vm406_vm1, %v3164_v30  ;;  %2678 = vmatprep.subr.mxu1 %v2963_v8 }
 0x195   : > { %2679 = vmatpush3.msra.mxu1 %v478_v4  ;;  %2686 = vmatprep.mubr.msk.f32.mxu1 %vm2964_vm2, %v2963_v8 }
 0x196   : > { %2680 = vmatprep.subr.mxu1 %v2963_v8 }
 0x197   : > { %2681 = vmatpush3.msra.mxu1 %v477_v5 }
 0x198   : > { %2682 = vmatprep.subr.mxu1 %v2963_v8 }
 0x199   : > { %2683 = vmatpush3.msra.mxu1 %v476_v6 }
 0x19a   : > { %2684 = vmatprep.subr.mxu1 %v2963_v8 }
 0x19b   : > { %2685 = vmatpush3.msra.mxu1 %v475_v7 }
 0x19c   : > { %2687 = vmatmul.mubr.msk.f32.vlgmr.msra.gmra.mxu1 %vm406_vm1, %v3164_v30  ;;  %2694 = vmatprep.subr.mxu1 %v2963_v8 }
 0x19d   : > { %2696 = vmatprep.mubr.msk.f32.mxu1 %vm2964_vm2, %v2963_v8 }
 0x225   : > { %v548_v9 = vpop.f32.mrf.mxu1  ;;  %v688_v10 = vpop.f32.mrf.mxu0 }
 0x227   : > { %v2567_v11 = vpop.f32.mrf.mxu1  ;;  %v2589_v12 = vpop.f32.mrf.mxu0 }
 0x22e   : > { %v618_v13 = vpop.f32.mrf.mxu1 }
 0x22f   : > { %v828_v14 = vpop.f32.mrf.mxu0 }
 0x230   : > { %2690 = vmatpush3.xpose.msk.msra.mxu0 %vm1322_vm3, %v828_v14  ;;  %v2578_v15 = vpop.f32.mrf.mxu1 }
 0x231   : > { %v2611_v16 = vpop.f32.mrf.mxu0  ;;  %2699 = vmatprep.subr.mxu0 %v2963_v8 }
 0x233   : > { %2692 = vmatmul.mubr.msk.f32.vlgmr.msra.gmra.mxu0 %vm1322_vm3, %v548_v9 }
 0x234   : > { %2701 = vmatprep.mubr.msk.f32.mxu0 %vm2964_vm2, %v2963_v8 }
 0x238   : > { %v758_v17 = vpop.f32.mrf.mxu1 }
 0x239   : > { %v968_v18 = vpop.f32.mrf.mxu0 }
 0x23a   : > { %2700 = vmatpush3.xpose.msk.msra.mxu0 %vm1322_vm3, %v968_v18  ;;  %v2600_v19 = vpop.f32.mrf.mxu1 }
 0x23b   : > { %v2633_v20 = vpop.f32.mrf.mxu0  ;;  %2709 = vmatprep.subr.mxu0 %v2963_v8  ;;  %v1983_v19 = vld [vmem:[%s3107_s20 + $0x18] sm:$0xff] }
 0x23c   : > { %v1982_v20 = vld [vmem:[%s3107_s20 + $0x10] sm:$0xff] }
 0x23d   : > { %2702 = vmatmul.mubr.msk.f32.vlgmr.msra.gmra.mxu0 %vm1322_vm3, %v688_v10 }
 0x23e   : > { %2711 = vmatprep.mubr.msk.f32.mxu0 %vm2964_vm2, %v2963_v8 }
 0x242   : > { %v898_v22 = vpop.f32.mrf.mxu1 }
 0x243   : > { %v1108_v24 = vpop.f32.mrf.mxu0  ;;  %2695 = vmatpush3.xpose.msk.msra.mxu1 %vm1322_vm3, %v898_v22  ;;  %v1981_v22 = vld [vmem:[%s3107_s20 + $0x8] sm:$0xff] }
 0x244   : > { %2710 = vmatpush3.msra.mxu0 %v1108_v24  ;;  %v2622_v25 = vpop.f32.mrf.mxu1  ;;  %2704 = vmatprep.subr.mxu1 %v2963_v8 }
 0x245   : > { %v2655_v26 = vpop.f32.mrf.mxu0  ;;  %2719 = vmatprep.subr.mxu0 %v2963_v8 }
 0x246   : > { %2697 = vmatmul.mubr.msk.f32.vlgmr.msra.gmra.mxu1 %vm1322_vm3, %v618_v13  ;;  %v1980_v26 = vld [vmem:[%s3107_s20] sm:$0xff] }
 0x247   : > { %2706 = vmatprep.mubr.msk.f32.mxu1 %vm2964_vm2, %v2963_v8 }
 0x24c   : > { %v1038_v27 = vpop.f32.mrf.mxu1 }
 0x24d   : > { %v3310_v28 = vpop.f32.mrf.mxu0  ;;  %2705 = vmatpush3.xpose.msk.msra.mxu1 %vm1322_vm3, %v1038_v27 }
 0x24e   : > { %v2644_v29 = vpop.f32.mrf.mxu1  ;;  %2714 = vmatprep.subr.mxu1 %v2963_v8 }
 0x24f   : > { %v2677_v30 = vpop.f32.mrf.mxu0 }
 0x250   : > { %2707 = vmatmul.mubr.msk.f32.vlgmr.msra.gmra.mxu1 %vm1322_vm3, %v758_v17 }
 0x251   : > { %2716 = vmatprep.mubr.msk.f32.mxu1 %vm2964_vm2, %v2963_v8 }
 0x254   : > { %v1178_v31 = vpop.f32.mrf.mxu1 }
 0x255   : > { %2715 = vmatpush3.msra.mxu1 %v1178_v31 }
 0x256   : > { %v2666_v32 = vpop.f32.mrf.mxu1  ;;  %2724 = vmatprep.subr.mxu1 %v2963_v8 }
 0x25c   : > { %v3318_v33 = vpop.f32.mrf.mxu1 }
 0x25e   : > { %v2688_v34 = vpop.f32.mrf.mxu1 }
 0x2f3   : > { %v1395_v35 = vpop.f32.mrf.mxu0 }
 0x2f4   : > { %v1627_v36 = vsel %vm1322_vm3, %v1395_v35, -inf }
 0x2f5   : > { %1628 = vmax.xlane.f32.xlu1 %v1627_v36  ;;  %v2693_v37 = vpop.f32.mrf.mxu0 }
 0x2fd   : > { %v1547_v38 = vpop.f32.mrf.mxu0 }
 0x2fe   : > { %v1633_v39 = vsel %vm1322_vm3, %v1547_v38, -inf }
 0x2ff   : > { %1634 = vmax.xlane.f32.xlu0 %v1633_v39  ;;  %v2703_v40 = vpop.f32.mrf.mxu0 }
 0x306   : > { %v1471_v41 = vpop.f32.mrf.mxu1 }
 0x307   : > { %v1630_v42 = vsel %vm1322_vm3, %v1471_v41, -inf }
 0x308   : > { %1631 = vmax.xlane.f32.xlu1 %v1630_v42  ;;  %v2698_v43 = vpop.f32.mrf.mxu1 }
 0x310   : > { %v1623_v44 = vpop.f32.mrf.mxu1 }
 0x311   : > { %v1636_v45 = vsel %vm1322_vm3, %v1623_v44, -inf }
 0x312   : > { %1637 = vmax.xlane.f32.xlu1 %v1636_v45  ;;  %v2708_v46 = vpop.f32.mrf.mxu1 }
 0x313   : > { %v2083_v46 = vld [vmem:[%s3112_s22 + $0x18] sm:$0xff] }
 0x37e   : > { %v1629_v47 = vpop.xlane.xlu1 %1628 }
 0x37f   : > { %v1639_v48 = vsub.f32 %v1395_v35, %v1629_v47  ;;  %v2082_v47 = vld [vmem:[%s3112_s22 + $0x10] sm:$0xff] }
 0x381   : > { %v1643_v49 = vmul.f32 1.442695, %v1639_v48  ;;  %v2080_v48 = vld [vmem:[%s3112_s22] sm:$0xff] }
 0x383   : > { %2849 = vpow2.f32 %v1643_v49 }
 0x388   : > { %v1635_v50 = vpop.xlane.xlu0 %1634 }
 0x389   : > { %v1641_v51 = vsub.f32 %v1547_v38, %v1635_v50 }
 0x38b   : > { %v1647_v52 = vmul.f32 1.442695, %v1641_v51 }
 0x38d   : > { %2851 = vpow2.f32 %v1647_v52  ;;  %v2072_v52 = vsub.s32 2, %v3155_v21 }
 0x390   : > { %v2850_v53 = vpop.eup %2849 }
 0x391   : > { %v1632_v54 = vpop.xlane.xlu1 %1631  ;;  %v1651_v55 = vsel %vm1322_vm3, %v2850_v53, 0.0 }
 0x392   : > { %v1640_v56 = vsub.f32 %v1471_v41, %v1632_v54  ;;  %1652 = vadd.xlane.f32.xlu0 %v1651_v55  ;;  %v2073_v54 = vrot.slane %v3159_v23, %v2072_v52 }
 0x394   : > { %v1645_v57 = vmul.f32 1.442695, %v1640_v56 }
 0x396   : > { %2853 = vpow2.f32 %v1645_v57 }
 0x39a   : > { %v2852_v58 = vpop.eup %2851 }
 0x39b   : > { %v1638_v59 = vpop.xlane.xlu1 %1637  ;;  %v1657_v60 = vsel %vm1322_vm3, %v2852_v58, 0.0 }
 0x39c   : > { %v1642_v61 = vsub.f32 %v1623_v44, %v1638_v59  ;;  %1658 = vadd.xlane.f32.xlu0 %v1657_v60  ;;  %v2176_v60 = vld [vmem:[%s3123_s29 + $0x38] sm:$0xff] }
 0x39e   : > { %v1649_v62 = vmul.f32 1.442695, %v1642_v61  ;;  %v2175_v61 = vld [vmem:[%s3123_s29 + $0x30] sm:$0xff] }
 0x3a0   : > { %2855 = vpow2.f32 %v1649_v62  ;;  %v2174_v62 = vld [vmem:[%s3123_s29 + $0x28] sm:$0xff] }
 0x3a3   : > { %v2854_v63 = vpop.eup %2853 }
 0x3a4   : > { %v1654_v0 = vsel %vm1322_vm3, %v2854_v63, 0.0 }
 0x3a5   : > { %1655 = vadd.xlane.f32.xlu1 %v1654_v0  ;;  %v2172_v0 = vld [vmem:[%s3123_s29 + $0x18] sm:$0xff] }
 0x3ad   : > { %v2856_v2 = vpop.eup %2855 }
 0x3ae   : > { %v1660_v3 = vsel %vm1322_vm3, %v2856_v2, 0.0 }
 0x3af   : > { %1661 = vadd.xlane.f32.xlu1 %v1660_v3  ;;  %v2170_v3 = vld [vmem:[%s3123_s29 + $0x8] sm:$0xff] }
 0x41b   : > { %v1653_v4 = vpop.xlane.xlu0 %1652 }
 0x41c   : > { %2857 = vrcp.f32 %v1653_v4  ;;  %v2169_v4 = vld [vmem:[%s3123_s29] sm:$0xff] }
 0x425   : > { %v1659_v5 = vpop.xlane.xlu0 %1658 }
 0x426   : > { %2859 = vrcp.f32 %v1659_v5  ;;  %v2452_v5 = vld [vmem:[%s3486_s17] ss:$0 sm:$0xff] }
 0x429   : > { %v2858_v6 = vpop.eup %2857 }
 0x42a   : > { %v1664_v7 = vmul.f32 %v2858_v6, %v2850_v53  ;;  %v2077_v53 = vsub.s32 3, %v3155_v21 }
 0x42c   : > { %2712 = vmatmul.mubr.msk.f32.vlgmr.msra.gmra.mxu0 %vm1322_vm3, %v1664_v7  ;;  %v2078_v57 = vrot.slane %v3159_v23, %v2077_v53 }
 0x42d   : > { %2720 = vmatpush3.msra.mxu0 %v3310_v28  ;;  %2721 = vmatprep.mubr.msk.f32.mxu0 %vm2964_vm2, %v2963_v8 }
 0x42e   : > { %v1656_v9 = vpop.xlane.xlu1 %1655  ;;  %2729 = vmatprep.subr.mxu0 %v2963_v8 }
 0x42f   : > { %2861 = vrcp.f32 %v1656_v9 }
 0x433   : > { %v2860_v10 = vpop.eup %2859 }
 0x434   : > { %v1668_v11 = vmul.f32 %v2860_v10, %v2852_v58 }
 0x436   : > { %2722 = vmatmul.mubr.msk.f32.vlgmr.msra.gmra.mxu0 %vm1322_vm3, %v1668_v11 }
 0x437   : > { %2737 = vmatprep.mubr.msk.f32.mxu0 %vm2964_vm2, %v2963_v8  ;;  %2730 = vmatpush3.msra.mxu0 %v1983_v19 }
 0x438   : > { %v1662_v12 = vpop.xlane.xlu1 %1661  ;;  %2731 = vmatprep.subr.mxu0 %v2963_v8 }
 0x439   : > { %2863 = vrcp.f32 %v1662_v12  ;;  %2732 = vmatpush3.msra.mxu0 %v1982_v20 }
 0x43a   : > { %2733 = vmatprep.subr.mxu0 %v2963_v8 }
 0x43b   : > { %2734 = vmatpush3.msra.mxu0 %v1981_v22 }
 0x43c   : > { %v2862_v13 = vpop.eup %2861  ;;  %2735 = vmatprep.subr.mxu0 %v2963_v8 }
 0x43d   : > { %v1666_v14 = vmul.f32 %v2862_v13, %v2854_v63  ;;  %2736 = vmatpush3.msra.mxu0 %v1980_v26  ;;  %v2173_v63 = vld [vmem:[%s3123_s29 + $0x20] sm:$0xff] }
 0x43e   : > { %2751 = vmatprep.subr.mxu0 %v2963_v8 }
 0x43f   : > { %2717 = vmatmul.mubr.msk.f32.vlgmr.msra.gmra.mxu1 %vm1322_vm3, %v1666_v14  ;;  %v2179_v14 = vsub.s32 4, %v3155_v21 }
 0x440   : > { %2725 = vmatpush3.msra.mxu1 %v3318_v33  ;;  %2726 = vmatprep.mubr.msk.f32.mxu1 %vm2964_vm2, %v2963_v8 }
 0x441   : > { %2740 = vmatprep.subr.mxu1 %v2963_v8 }
 0x446   : > { %v2864_v15 = vpop.eup %2863 }
 0x447   : > { %v1670_v16 = vmul.f32 %v2864_v15, %v2856_v2  ;;  %v2171_v2 = vld [vmem:[%s3123_s29 + $0x10] sm:$0xff]  ;;  %v2180_v15 = vrot.slane %v3159_v23, %v2179_v14  ;;  %s2456_s29 = sshll.u32 %s2949_s28, 7  ;;  %s2869_s28 = scalar_lea.vmem %s2273_s18, 128 }
 0x448   : > { %s3404_s20 = scalar_lea.hbm %s3463_s7, %s2456_s29  ;;  %p2870_p1 = scmp.ne.s32.totalorder %s2273_s18, %s2869_s28 }
 0x449   : > { %2727 = vmatmul.mubr.msk.f32.vlgmr.msra.gmra.mxu1 %vm1322_vm3, %v1670_v16  ;;  %p2877_p6 = scmp.lt.s32.totalorder %s2875_s15, %s2869_s28 }
 0x44a   : > { %2748 = vmatprep.mubr.msk.f32.mxu1 %vm2964_vm2, %v2963_v8  ;;  %2741 = vmatpush3.msra.mxu1 %v2083_v46  ;;  %p2871_p2 = pnand %p2870_p1, %p3058_p3 }
 0x44b   : > { %2742 = vmatprep.subr.mxu1 %v2963_v8  ;;  %p2878_p7 = por %p2877_p6, %p2876_p5 }
 0x44c   : > { %2743 = vmatpush3.msra.mxu1 %v2082_v47  ;;  %p2872_p4 = pneg %p2871_p2 }
 0x44d   : > { %2744 = vmatprep.subr.mxu1 %v2963_v8 }
 0x44e   : > { %p2879_p8 = pnand %p2878_p7, %p2872_p4 }
 0x4ec   : > { %v1740_v17 = vpop.f32.mrf.mxu0 }
 0x4ee   : > { %v2713_v18 = vpop.f32.mrf.mxu0 }
 0x4f6   : > { %v1886_v24 = vpop.f32.mrf.mxu0 }
 0x4f7   : > { %1968 = vrot.lane.b32.xlu1 %v1886_v24, %s2965_s24 }
 0x4f8   : > { %v2723_v25 = vpop.f32.mrf.mxu0 }
 0x4ff   : > { %v1813_v27 = vpop.f32.mrf.mxu1 }
 0x500   : > { %1964 = vrot.lane.b32.xlu0 %v1813_v27, %s2966_s26 }
 0x501   : > { %v2718_v28 = vpop.f32.mrf.mxu1 }
 0x509   : > { %v1959_v29 = vpop.f32.mrf.mxu1 }
 0x50a   : > { %1972 = vrot.lane.b32.xlu1 %v1959_v29, %s2967_s27 }
 0x50b   : > { %v2728_v30 = vpop.f32.mrf.mxu1 }
 0x569   : > { %v1969_v32 = vpop.permute.xlu1 %1968 }
 0x572   : > { %v1965_v31 = vpop.permute.xlu0 %1964 }
 0x573   : > { %v1975_v33 = vsel %vm1322_vm3, %v1740_v17, %v1965_v31 }
 0x574   : > { %v1977_v34 = vsel %vm1976_vm4, %v1975_v33, %v1969_v32 }
 0x57c   : > { %v1973_v35 = vpop.permute.xlu1 %1972 }
 0x57d   : > { %v1979_v36 = vsel %vm1978_vm5, %v1977_v34, %v1973_v35 }
 0x57e   : > { %2738 = vmatmul.mubr.msk.f32.vlgmr.msra.gmra.mxu0 %vm406_vm1, %v1979_v36 }
 0x57f   : > { %2767 = vmatprep.mubr.msk.f32.mxu0 %vm2964_vm2, %v2963_v8  ;;  %2752 = vmatpush3.msra.mxu0 %v2176_v60 }
 0x580   : > { %2753 = vmatprep.subr.mxu0 %v2963_v8 }
 0x581   : > { %2754 = vmatpush3.msra.mxu0 %v2175_v61 }
 0x582   : > { %2755 = vmatprep.subr.mxu0 %v2963_v8 }
 0x583   : > { %2756 = vmatpush3.msra.mxu0 %v2174_v62 }
 0x584   : > { %2757 = vmatprep.subr.mxu0 %v2963_v8 }
 0x585   : > { %2758 = vmatpush3.msra.mxu0 %v2173_v63 }
 0x586   : > { %2759 = vmatprep.subr.mxu0 %v2963_v8 }
 0x587   : > { %2760 = vmatpush3.msra.mxu0 %v2172_v0 }
 0x588   : > { %2761 = vmatprep.subr.mxu0 %v2963_v8 }
 0x589   : > { %2762 = vmatpush3.msra.mxu0 %v2171_v2 }
 0x58a   : > { %2763 = vmatprep.subr.mxu0 %v2963_v8 }
 0x58b   : > { %2764 = vmatpush3.msra.mxu0 %v2170_v3 }
 0x58c   : > { %2765 = vmatprep.subr.mxu0 %v2963_v8 }
 0x58d   : > { %2766 = vmatpush3.msra.mxu0 %v2169_v4 }
 0x63e   : > { %v2053_v37 = vpop.f32.mrf.mxu0 }
 0x63f   : > { %v3357_v38 = vadd.f32 %v2053_v37, %v3127_v1  ;;  %v2081_v1 = vld [vmem:[%s3112_s22 + $0x8] sm:$0xff]  ;;  %s2259_s22 = scalar_lea.sflag [#allocation4], %s3487_s23 }
 0x640   : > { %v2739_v39 = vpop.f32.mrf.mxu0  ;;  %2745 = vmatpush3.msra.mxu1 %v2081_v1 }
 0x641   : > { %v2057_v40 = vsel %vm406_vm1, %v3357_v38, 0.0  ;;  %2746 = vmatprep.subr.mxu1 %v2963_v8 }
 0x642   : > { %2058 = vadd.xlane.f32.xlu1 %v2057_v40  ;;  %2747 = vmatpush3.msra.mxu1 %v2080_v48 }
 0x6cb   : > { %v2059_v41 = vpop.xlane.xlu1 %2058 }
 0x6cc   : > { %v2060_v42 = vmul.f32 0.03125, %v2059_v41 }
 0x6ce   : > { %v2061_v43 = vsub.f32 %v3357_v38, %v2060_v42 }
 0x6d0   : > { %v2062_v44 = vmul.f32 %v2061_v43, %v2061_v43 }
 0x6d2   : > { %v2063_v45 = vsel %vm406_vm1, %v2062_v44, 0.0 }
 0x6d3   : > { %2064 = vadd.xlane.f32.xlu0 %v2063_v45 }
 0x75c   : > { %v2065_v49 = vpop.xlane.xlu0 %2064 }
 0x75d   : > { %v2066_v50 = vmul.f32 0.03125, %v2065_v49 }
 0x75f   : > { %v2067_v51 = vadd.f32 1e-05, %v2066_v50 }
 0x761   : > { %2865 = vrsqrt.f32 %v2067_v51 }
 0x76e   : > { %v2866_v55 = vpop.eup %2865 }
 0x76f   : > { %v2069_v56 = vmul.f32 %v2866_v55, %v2061_v43 }
 0x771   : > { %v2074_v58 = vmul.f32 %v2073_v54, %v2069_v56 }
 0x773   : > { %v2079_v59 = vadd.f32 %v2078_v57, %v2074_v58 }
 0x775   : > { %2749 = vmatmul.mubr.msk.f32.vlgmr.msra.gmra.mxu1 %vm406_vm1, %v2079_v59 }
 0x835   : > { %v2160_v6 = vpop.f32.mrf.mxu1 }
 0x836   : > { %v2161_v7 = vadd.f32 %v2452_v5, %v2160_v6 }
 0x837   : > { %v2750_v9 = vpop.f32.mrf.mxu1 }
 0x838   : > { %v2165_v10 = vmul.f32 0.70710677, %v2161_v7  ;;  %v2164_v12 = vmul.f32 0.5, %v2161_v7 }
 0x83a   : > { %2867 = verf.f32 %v2165_v10 }
 0x847   : > { %v2868_v11 = vpop.eup %2867 }
 0x848   : > { %v2167_v13 = vadd.f32 1.0, %v2868_v11 }
 0x84a   : > { %v2168_v8 = vmul.f32 %v2167_v13, %v2164_v12 }
 0x84c   : > { %2768 = vmatmul.mubr.msk.f32.vlgmr.msra.gmra.mxu0 %vm2181_vm6, %v2168_v8 }
 0x90c   : > { %v2251_v16 = vpop.f32.mrf.mxu0 }
 0x90d   : > { %v2252_v17 = vadd.f32 %v2251_v16, %v2180_v15 }
 0x90e   : > { %v2769_v18 = vpop.f32.mrf.mxu0 }
 0x90f   : > { %v2255_v19 = vadd.f32 %v2252_v17, %v3357_v38 }
 0x911   : > { %2256 = vst.msk [vmem:[#allocation2] sm:$0xff] %vm406_vm1, %v2255_v19  ;;  %2257 = vst.msk [vmem:[%s365_s0] sm:$0xff] %vm406_vm1, %v2255_v19 }
 0x912   : > { %2882 = shalt.err (!%p2879_p8)
}
 0x913   : > { %s2883_s0 = scalar_lea.hbm %s3404_s20, 128  ;;  %s2887_s30 = scalar_lea.hbm %s3463_s7, 256 }
 0x914   : > { %p2884_p10 = scmp.ne.s32.totalorder %s3404_s20, %s2883_s0  ;;  %p2888_p13 = scmp.lt.s32.totalorder %s3404_s20, %s3463_s7 }
 0x915   : > { %p2889_p0 = scmp.lt.s32.totalorder %s2887_s30, %s2883_s0 }
 0x916   : > { %p2885_p11 = pnand %p2884_p10, %p3058_p3 }
 0x917   : > { %p2890_p1 = por %p2889_p0, %p2888_p13 }
 0x918   : > { %p2886_p12 = pneg %p2885_p11 }
 0x91a   : > { %p2891_p2 = pnand %p2890_p1, %p2886_p12 }
 0x91c   : > { %2894 = shalt.err (!%p2891_p2)
}
 0x91d   : > { %2771 = dma.vmem_to_hbm [thread:$0]  (%p3058_p3), %s2273_s18, 128, %s3404_s20, %s2259_s22  }
 0x91e PF: > { %s3488_s26 = sld [smem:[#allocation10_spill]] }
 0x91f   : > { %s3489_s27 = sld [smem:[#allocation6_spill]] }
 0x924   : > { %p2777_p4 = scmp.ge.s32.totalorder %s3488_s26, 2 }
 0x925   : > { %s2284_s14 = sand.u32 1, %s3489_s27  }
 0x926   : > { %p2774_p5 = pnand %p2777_p4, %p3068_p9  ;;  %s2285_s17 = scalar_lea.sflag [#allocation4], %s2284_s14 }
 0x928   : > { %p2775_p6 = pneg %p2774_p5 }
 0x92a   : > { %2928 = dma.done.wait (%p2775_p6), %s2285_s17, 128  }
 0x92b   : > { %2930 = vsyncadd (%p2775_p6), %s2285_s17, 4294967168  ;;  %s20_s8 = sadd.s32 1, %s3488_s26   ;;  %s3491_s29 = sld [smem:[#allocation7_spill]] }
 0x92c   : > { %p17_p7 = scmp.ge.s32.totalorder %s20_s8, 6   ;;  %s3492_s26 = sld [smem:[#allocation14_spill]] }
 0x92d   : > { %s3493_s27 = sld [smem:[#allocation8_spill]]  ;;  %s3497_s24 = smov %s2937_s25 }
 0x92e   : > { %s3494_s28 = sld [smem:[#allocation9_spill]] }
 0x92f   : > { %s3495_s13 = sld [smem:[#allocation11_spill]] }
 0x930   : > { %s3496_s30 = sld [smem:[#allocation12_spill]] }
 0x931   : > { %s3498_s25 = smov %s3491_s29  ;;  %19 = sbr.rel (!%p17_p7) target bundleno = 7 (0x7), region = 105 }
 0x935   : > { %s3499_s29 = smov %s3495_s13 }
 0x936   :  { %2290 = vsyncpa [#allocation4], 1 }
 0x937   :  { %2292 = vsyncpa [#allocation4 + $0x1], 1 }

</bundles_post_ra>
